<compile_context>
chip_gen: v5e
topology: v5e:2x2
jax: 0.10.0
libtpu: 0.0.40
codegen_flags: <defaults>
</compile_context>

<pallas_src>
import functools

import jax
import jax.numpy as jnp
import numpy as np
from jax.experimental import pallas as pl
from jax.experimental.pallas import tpu as pltpu

LANE = 128  # TPU lane width: positions live on the lane axis.


def attention_ffm_kernel(w_ref, x_ref, o_ref, *, C):
    """One grid step: a (1, C, tile_sub, 128) slab of positions, NCL layout.

    w_ref : SMEM (C*C,) f32 -- flattened vk @ vk.T (symmetric).
    x_ref : VMEM (1, C, tile_sub, 128) f32.
    o_ref : VMEM (1, C, tile_sub, 128) f32.
    """
    v = x_ref[0]                                    # (C, tile_sub, 128)

    # Unique upper-triangular scores s_ij = (v_i * v_j) * w_ij (X, w symmetric).
    # TODO(synk): for large C replace the fully-unrolled channel loops with a
    # fori_loop / sublane-axis formulation (fine here: C is tiny and static).
    s = {}
    for i in range(C):
        for j in range(i, C):
            s[(i, j)] = (v[i] * v[j]) * w_ref[i * C + j]

    # Shared per-position max over all (i, j): subtracting a per-position
    # constant leaves every row softmax unchanged, but lets each exp(s_ij) be
    # reused for both row i and row j (10 exps instead of 16 for C=4).
    m = None
    for val in s.values():
        m = val if m is None else jnp.maximum(m, val)
    e = {k: jnp.exp(val - m) for k, val in s.items()}

    # out_i = (sum_j X_ij * e_ij) * (1 / sum_j e_ij).  X_ij is recomputed (one
    # cheap VPU mult) rather than cached, keeping the live slab count low.
    for i in range(C):
        numer = None
        denom = None
        for j in range(C):
            eij = e[(min(i, j), max(i, j))]
            xij = v[i] * v[j]
            numer = xij * eij if numer is None else numer + xij * eij
            denom = eij if denom is None else denom + eij
        o_ref[0, i] = numer * pl.reciprocal(denom)  # exact; 1 recip per (i, pos)


def attention_ffm(x, vk, *, tile_sub=512):
    """x: (B, C, S) float32 (PyTorch NCL layout).  vk: (C, K).  Returns (B, C, S)."""
    B, C, S = x.shape
    assert vk.shape[0] == C
    w = jnp.matmul(vk, vk.T).reshape(-1)            # (C*C,) tiny -> SMEM prefetch

    # Positions -> (sublane, lane): S -> (sub_pad, 128).  Reshape of a contiguous
    # NCL tensor is metadata-only; zero padding is softmax-safe (sliced off below).
    sub_total = pl.cdiv(S, LANE)
    if sub_total <= tile_sub:
        tile_sub = sub_total                        # single full-extent S block
        sub_pad = sub_total
    else:
        tile_sub = max(8, (tile_sub // 8) * 8)      # keep sublane dim 8-aligned
        sub_pad = pl.cdiv(sub_total, tile_sub) * tile_sub
    S_pad = sub_pad * LANE
    if S_pad != S:
        x = jnp.pad(x, ((0, 0), (0, 0), (0, S_pad - S)))
    x4 = x.reshape(B, C, sub_pad, LANE)

    grid = (B, sub_pad // tile_sub)                 # both axes fully parallel
    blk = (1, C, tile_sub, LANE)
    idx = lambda b, s, w_sref: (b, 0, s, 0)         # prefetch ref is trailing arg

    n = B * S_pad
    pairs = C * (C + 1) // 2
    cost = pl.CostEstimate(
        flops=n * (3 * pairs + 3 * C * C + 2 * C),
        transcendentals=n * (pairs + C),
        bytes_accessed=2 * n * C * 4 + C * C * 4,
    )

    out4 = pl.pallas_call(
        functools.partial(attention_ffm_kernel, C=C),
        out_shape=jax.ShapeDtypeStruct((B, C, sub_pad, LANE), x.dtype),
        grid_spec=pltpu.PrefetchScalarGridSpec(
            num_scalar_prefetch=1,
            grid=grid,
            in_specs=[pl.BlockSpec(blk, idx)],
            out_specs=pl.BlockSpec(blk, idx)),
        compiler_params=pltpu.CompilerParams(
            dimension_semantics=("parallel", "parallel")),
        cost_estimate=cost,
    )(w, x4)

    out = out4.reshape(B, C, S_pad)
    return out if S_pad == S else out[:, :, :S]


def attention_ffm_ref(x, vk):
    """Pure-JAX reference mirroring the PyTorch forward 1:1."""
    v = jnp.transpose(x, (0, 2, 1))                    # (B, S, C)
    X = v[:, :, :, None] * v[:, :, None, :]            # (B, S, C, C)
    w = vk @ vk.T                                      # (C, C)
    x_p = X * w[None, None, :, :]
    proba = jax.nn.softmax(x_p, axis=3)
    out = jnp.sum(X * proba, axis=3)                   # (B, S, C)
    return jnp.transpose(out, (0, 2, 1))               # (B, C, S)


if __name__ == "__main__":
    C, K = 4, 8                                        # m = C = 4, k = K = 8
    key = jax.random.PRNGKey(0)
    kvk, kx1, kx2, kx3 = jax.random.split(key, 4)
    # xavier_uniform_ for vk of shape (m, k): U(-a, a), a = sqrt(6 / (m + k))
    a = float(np.sqrt(6.0 / (C + K)))
    vk = jax.random.uniform(kvk, (C, K), minval=-a, maxval=a, dtype=jnp.float32)

    cases = [
        (kx1, 2, 16, {}),                   # tiny S (< 128): zero-padded single block
        (kx2, 2, 1024, {}),                 # one full-extent S block per batch
        (kx3, 2, 6000, {"tile_sub": 16}),   # multi-block S grid + padding path
    ]
    for kx, B, S, kw in cases:
        x = jax.random.normal(kx, (B, C, S), dtype=jnp.float32)
        out = jax.block_until_ready(attention_ffm(x, vk, **kw))
        ref = attention_ffm_ref(x, vk)
        np.testing.assert_allclose(np.asarray(out), np.asarray(ref),
                                   rtol=1e-4, atol=1e-4)
    print("KERNEL_OK")
</pallas_src>

<mosaic_0001>
module attributes {stable_mosaic.version = 11 : i64} {
  func.func @attention_ffm_kernel(%arg0: i32, %arg1: i32, %arg2: memref<16xf32, #tpu.memory_space<smem>>, %arg3: memref<1x4x1x128xf32, #tpu.memory_space<vmem>>, %arg4: memref<1x4x1x128xf32, #tpu.memory_space<vmem>>) attributes {dimension_semantics = [#tpu.dimension_semantics<parallel>, #tpu.dimension_semantics<parallel>], iteration_bounds = array<i64: 2, 1>, scalar_prefetch = 1 : i64, scratch_operands = 0 : i64, tpu.core_type = #tpu.core_type<tc>, window_params = [{transform_indices = @transform_0, window_bounds = array<i64: 1, 4, 1, 128>}, {transform_indices = @transform_1, window_bounds = array<i64: 1, 4, 1, 128>}]} {
    %c0 = arith.constant 0 : index
    %c0_0 = arith.constant 0 : index
    %c0_1 = arith.constant 0 : index
    %c0_2 = arith.constant 0 : index
    %0 = vector.load %arg3[%c0, %c0_0, %c0_1, %c0_2] : memref<1x4x1x128xf32, #tpu.memory_space<vmem>>, vector<1x4x1x128xf32>
    %1 = vector.shape_cast %0 : vector<1x4x1x128xf32> to vector<4x1x128xf32>
    %2 = vector.extract_strided_slice %1 {offsets = [0, 0, 0], sizes = [1, 1, 128], strides = [1, 1, 1]} : vector<4x1x128xf32> to vector<1x1x128xf32>
    %3 = vector.shape_cast %2 : vector<1x1x128xf32> to vector<1x128xf32>
    %4 = vector.extract_strided_slice %1 {offsets = [0, 0, 0], sizes = [1, 1, 128], strides = [1, 1, 1]} : vector<4x1x128xf32> to vector<1x1x128xf32>
    %5 = vector.shape_cast %4 : vector<1x1x128xf32> to vector<1x128xf32>
    %6 = arith.mulf %3, %5 : vector<1x128xf32>
    %c0_3 = arith.constant 0 : index
    %7 = memref.load %arg2[%c0_3] : memref<16xf32, #tpu.memory_space<smem>>
    %8 = vector.broadcast %7 : f32 to vector<1x128xf32>
    %9 = arith.mulf %6, %8 : vector<1x128xf32>
    %10 = vector.extract_strided_slice %1 {offsets = [0, 0, 0], sizes = [1, 1, 128], strides = [1, 1, 1]} : vector<4x1x128xf32> to vector<1x1x128xf32>
    %11 = vector.shape_cast %10 : vector<1x1x128xf32> to vector<1x128xf32>
    %12 = vector.extract_strided_slice %1 {offsets = [1, 0, 0], sizes = [1, 1, 128], strides = [1, 1, 1]} : vector<4x1x128xf32> to vector<1x1x128xf32>
    %13 = vector.shape_cast %12 : vector<1x1x128xf32> to vector<1x128xf32>
    %14 = arith.mulf %11, %13 : vector<1x128xf32>
    %c1 = arith.constant 1 : index
    %15 = memref.load %arg2[%c1] : memref<16xf32, #tpu.memory_space<smem>>
    %16 = vector.broadcast %15 : f32 to vector<1x128xf32>
    %17 = arith.mulf %14, %16 : vector<1x128xf32>
    %18 = vector.extract_strided_slice %1 {offsets = [0, 0, 0], sizes = [1, 1, 128], strides = [1, 1, 1]} : vector<4x1x128xf32> to vector<1x1x128xf32>
    %19 = vector.shape_cast %18 : vector<1x1x128xf32> to vector<1x128xf32>
    %20 = vector.extract_strided_slice %1 {offsets = [2, 0, 0], sizes = [1, 1, 128], strides = [1, 1, 1]} : vector<4x1x128xf32> to vector<1x1x128xf32>
    %21 = vector.shape_cast %20 : vector<1x1x128xf32> to vector<1x128xf32>
    %22 = arith.mulf %19, %21 : vector<1x128xf32>
    %c2 = arith.constant 2 : index
    %23 = memref.load %arg2[%c2] : memref<16xf32, #tpu.memory_space<smem>>
    %24 = vector.broadcast %23 : f32 to vector<1x128xf32>
    %25 = arith.mulf %22, %24 : vector<1x128xf32>
    %26 = vector.extract_strided_slice %1 {offsets = [0, 0, 0], sizes = [1, 1, 128], strides = [1, 1, 1]} : vector<4x1x128xf32> to vector<1x1x128xf32>
    %27 = vector.shape_cast %26 : vector<1x1x128xf32> to vector<1x128xf32>
    %28 = vector.extract_strided_slice %1 {offsets = [3, 0, 0], sizes = [1, 1, 128], strides = [1, 1, 1]} : vector<4x1x128xf32> to vector<1x1x128xf32>
    %29 = vector.shape_cast %28 : vector<1x1x128xf32> to vector<1x128xf32>
    %30 = arith.mulf %27, %29 : vector<1x128xf32>
    %c3 = arith.constant 3 : index
    %31 = memref.load %arg2[%c3] : memref<16xf32, #tpu.memory_space<smem>>
    %32 = vector.broadcast %31 : f32 to vector<1x128xf32>
    %33 = arith.mulf %30, %32 : vector<1x128xf32>
    %34 = vector.extract_strided_slice %1 {offsets = [1, 0, 0], sizes = [1, 1, 128], strides = [1, 1, 1]} : vector<4x1x128xf32> to vector<1x1x128xf32>
    %35 = vector.shape_cast %34 : vector<1x1x128xf32> to vector<1x128xf32>
    %36 = vector.extract_strided_slice %1 {offsets = [1, 0, 0], sizes = [1, 1, 128], strides = [1, 1, 1]} : vector<4x1x128xf32> to vector<1x1x128xf32>
    %37 = vector.shape_cast %36 : vector<1x1x128xf32> to vector<1x128xf32>
    %38 = arith.mulf %35, %37 : vector<1x128xf32>
    %c5 = arith.constant 5 : index
    %39 = memref.load %arg2[%c5] : memref<16xf32, #tpu.memory_space<smem>>
    %40 = vector.broadcast %39 : f32 to vector<1x128xf32>
    %41 = arith.mulf %38, %40 : vector<1x128xf32>
    %42 = vector.extract_strided_slice %1 {offsets = [1, 0, 0], sizes = [1, 1, 128], strides = [1, 1, 1]} : vector<4x1x128xf32> to vector<1x1x128xf32>
    %43 = vector.shape_cast %42 : vector<1x1x128xf32> to vector<1x128xf32>
    %44 = vector.extract_strided_slice %1 {offsets = [2, 0, 0], sizes = [1, 1, 128], strides = [1, 1, 1]} : vector<4x1x128xf32> to vector<1x1x128xf32>
    %45 = vector.shape_cast %44 : vector<1x1x128xf32> to vector<1x128xf32>
    %46 = arith.mulf %43, %45 : vector<1x128xf32>
    %c6 = arith.constant 6 : index
    %47 = memref.load %arg2[%c6] : memref<16xf32, #tpu.memory_space<smem>>
    %48 = vector.broadcast %47 : f32 to vector<1x128xf32>
    %49 = arith.mulf %46, %48 : vector<1x128xf32>
    %50 = vector.extract_strided_slice %1 {offsets = [1, 0, 0], sizes = [1, 1, 128], strides = [1, 1, 1]} : vector<4x1x128xf32> to vector<1x1x128xf32>
    %51 = vector.shape_cast %50 : vector<1x1x128xf32> to vector<1x128xf32>
    %52 = vector.extract_strided_slice %1 {offsets = [3, 0, 0], sizes = [1, 1, 128], strides = [1, 1, 1]} : vector<4x1x128xf32> to vector<1x1x128xf32>
    %53 = vector.shape_cast %52 : vector<1x1x128xf32> to vector<1x128xf32>
    %54 = arith.mulf %51, %53 : vector<1x128xf32>
    %c7 = arith.constant 7 : index
    %55 = memref.load %arg2[%c7] : memref<16xf32, #tpu.memory_space<smem>>
    %56 = vector.broadcast %55 : f32 to vector<1x128xf32>
    %57 = arith.mulf %54, %56 : vector<1x128xf32>
    %58 = vector.extract_strided_slice %1 {offsets = [2, 0, 0], sizes = [1, 1, 128], strides = [1, 1, 1]} : vector<4x1x128xf32> to vector<1x1x128xf32>
    %59 = vector.shape_cast %58 : vector<1x1x128xf32> to vector<1x128xf32>
    %60 = vector.extract_strided_slice %1 {offsets = [2, 0, 0], sizes = [1, 1, 128], strides = [1, 1, 1]} : vector<4x1x128xf32> to vector<1x1x128xf32>
    %61 = vector.shape_cast %60 : vector<1x1x128xf32> to vector<1x128xf32>
    %62 = arith.mulf %59, %61 : vector<1x128xf32>
    %c10 = arith.constant 10 : index
    %63 = memref.load %arg2[%c10] : memref<16xf32, #tpu.memory_space<smem>>
    %64 = vector.broadcast %63 : f32 to vector<1x128xf32>
    %65 = arith.mulf %62, %64 : vector<1x128xf32>
    %66 = vector.extract_strided_slice %1 {offsets = [2, 0, 0], sizes = [1, 1, 128], strides = [1, 1, 1]} : vector<4x1x128xf32> to vector<1x1x128xf32>
    %67 = vector.shape_cast %66 : vector<1x1x128xf32> to vector<1x128xf32>
    %68 = vector.extract_strided_slice %1 {offsets = [3, 0, 0], sizes = [1, 1, 128], strides = [1, 1, 1]} : vector<4x1x128xf32> to vector<1x1x128xf32>
    %69 = vector.shape_cast %68 : vector<1x1x128xf32> to vector<1x128xf32>
    %70 = arith.mulf %67, %69 : vector<1x128xf32>
    %c11 = arith.constant 11 : index
    %71 = memref.load %arg2[%c11] : memref<16xf32, #tpu.memory_space<smem>>
    %72 = vector.broadcast %71 : f32 to vector<1x128xf32>
    %73 = arith.mulf %70, %72 : vector<1x128xf32>
    %74 = vector.extract_strided_slice %1 {offsets = [3, 0, 0], sizes = [1, 1, 128], strides = [1, 1, 1]} : vector<4x1x128xf32> to vector<1x1x128xf32>
    %75 = vector.shape_cast %74 : vector<1x1x128xf32> to vector<1x128xf32>
    %76 = vector.extract_strided_slice %1 {offsets = [3, 0, 0], sizes = [1, 1, 128], strides = [1, 1, 1]} : vector<4x1x128xf32> to vector<1x1x128xf32>
    %77 = vector.shape_cast %76 : vector<1x1x128xf32> to vector<1x128xf32>
    %78 = arith.mulf %75, %77 : vector<1x128xf32>
    %c15 = arith.constant 15 : index
    %79 = memref.load %arg2[%c15] : memref<16xf32, #tpu.memory_space<smem>>
    %80 = vector.broadcast %79 : f32 to vector<1x128xf32>
    %81 = arith.mulf %78, %80 : vector<1x128xf32>
    %82 = arith.maximumf %9, %17 : vector<1x128xf32>
    %83 = arith.maximumf %82, %25 : vector<1x128xf32>
    %84 = arith.maximumf %83, %33 : vector<1x128xf32>
    %85 = arith.maximumf %84, %41 : vector<1x128xf32>
    %86 = arith.maximumf %85, %49 : vector<1x128xf32>
    %87 = arith.maximumf %86, %57 : vector<1x128xf32>
    %88 = arith.maximumf %87, %65 : vector<1x128xf32>
    %89 = arith.maximumf %88, %73 : vector<1x128xf32>
    %90 = arith.maximumf %89, %81 : vector<1x128xf32>
    %91 = arith.subf %9, %90 : vector<1x128xf32>
    %92 = math.exp %91 : vector<1x128xf32>
    %93 = arith.subf %17, %90 : vector<1x128xf32>
    %94 = math.exp %93 : vector<1x128xf32>
    %95 = arith.subf %25, %90 : vector<1x128xf32>
    %96 = math.exp %95 : vector<1x128xf32>
    %97 = arith.subf %33, %90 : vector<1x128xf32>
    %98 = math.exp %97 : vector<1x128xf32>
    %99 = arith.subf %41, %90 : vector<1x128xf32>
    %100 = math.exp %99 : vector<1x128xf32>
    %101 = arith.subf %49, %90 : vector<1x128xf32>
    %102 = math.exp %101 : vector<1x128xf32>
    %103 = arith.subf %57, %90 : vector<1x128xf32>
    %104 = math.exp %103 : vector<1x128xf32>
    %105 = arith.subf %65, %90 : vector<1x128xf32>
    %106 = math.exp %105 : vector<1x128xf32>
    %107 = arith.subf %73, %90 : vector<1x128xf32>
    %108 = math.exp %107 : vector<1x128xf32>
    %109 = arith.subf %81, %90 : vector<1x128xf32>
    %110 = math.exp %109 : vector<1x128xf32>
    %111 = vector.extract_strided_slice %1 {offsets = [0, 0, 0], sizes = [1, 1, 128], strides = [1, 1, 1]} : vector<4x1x128xf32> to vector<1x1x128xf32>
    %112 = vector.shape_cast %111 : vector<1x1x128xf32> to vector<1x128xf32>
    %113 = vector.extract_strided_slice %1 {offsets = [0, 0, 0], sizes = [1, 1, 128], strides = [1, 1, 1]} : vector<4x1x128xf32> to vector<1x1x128xf32>
    %114 = vector.shape_cast %113 : vector<1x1x128xf32> to vector<1x128xf32>
    %115 = arith.mulf %112, %114 : vector<1x128xf32>
    %116 = arith.mulf %115, %92 : vector<1x128xf32>
    %117 = vector.extract_strided_slice %1 {offsets = [0, 0, 0], sizes = [1, 1, 128], strides = [1, 1, 1]} : vector<4x1x128xf32> to vector<1x1x128xf32>
    %118 = vector.shape_cast %117 : vector<1x1x128xf32> to vector<1x128xf32>
    %119 = vector.extract_strided_slice %1 {offsets = [1, 0, 0], sizes = [1, 1, 128], strides = [1, 1, 1]} : vector<4x1x128xf32> to vector<1x1x128xf32>
    %120 = vector.shape_cast %119 : vector<1x1x128xf32> to vector<1x128xf32>
    %121 = arith.mulf %118, %120 : vector<1x128xf32>
    %122 = arith.mulf %121, %94 : vector<1x128xf32>
    %123 = arith.addf %116, %122 : vector<1x128xf32>
    %124 = arith.addf %92, %94 : vector<1x128xf32>
    %125 = vector.extract_strided_slice %1 {offsets = [0, 0, 0], sizes = [1, 1, 128], strides = [1, 1, 1]} : vector<4x1x128xf32> to vector<1x1x128xf32>
    %126 = vector.shape_cast %125 : vector<1x1x128xf32> to vector<1x128xf32>
    %127 = vector.extract_strided_slice %1 {offsets = [2, 0, 0], sizes = [1, 1, 128], strides = [1, 1, 1]} : vector<4x1x128xf32> to vector<1x1x128xf32>
    %128 = vector.shape_cast %127 : vector<1x1x128xf32> to vector<1x128xf32>
    %129 = arith.mulf %126, %128 : vector<1x128xf32>
    %130 = arith.mulf %129, %96 : vector<1x128xf32>
    %131 = arith.addf %123, %130 : vector<1x128xf32>
    %132 = arith.addf %124, %96 : vector<1x128xf32>
    %133 = vector.extract_strided_slice %1 {offsets = [0, 0, 0], sizes = [1, 1, 128], strides = [1, 1, 1]} : vector<4x1x128xf32> to vector<1x1x128xf32>
    %134 = vector.shape_cast %133 : vector<1x1x128xf32> to vector<1x128xf32>
    %135 = vector.extract_strided_slice %1 {offsets = [3, 0, 0], sizes = [1, 1, 128], strides = [1, 1, 1]} : vector<4x1x128xf32> to vector<1x1x128xf32>
    %136 = vector.shape_cast %135 : vector<1x1x128xf32> to vector<1x128xf32>
    %137 = arith.mulf %134, %136 : vector<1x128xf32>
    %138 = arith.mulf %137, %98 : vector<1x128xf32>
    %139 = arith.addf %131, %138 : vector<1x128xf32>
    %140 = arith.addf %132, %98 : vector<1x128xf32>
    %141 = tpu.reciprocal %140 : vector<1x128xf32> -> vector<1x128xf32>
    %142 = arith.mulf %139, %141 : vector<1x128xf32>
    %c0_4 = arith.constant 0 : index
    %c0_5 = arith.constant 0 : index
    %c0_6 = arith.constant 0 : index
    %c0_7 = arith.constant 0 : index
    %143 = vector.load %arg4[%c0_4, %c0_5, %c0_6, %c0_7] : memref<1x4x1x128xf32, #tpu.memory_space<vmem>>, vector<1x1x1x128xf32>
    %144 = vector.shape_cast %143 : vector<1x1x1x128xf32> to vector<1x128xf32>
    %145 = vector.shape_cast %142 : vector<1x128xf32> to vector<1x1x1x128xf32>
    tpu.vector_store %arg4[%c0_4, %c0_5, %c0_6, %c0_7], %145 {strides = array<i32>} : memref<1x4x1x128xf32, #tpu.memory_space<vmem>>, vector<1x1x1x128xf32>,
    %146 = vector.extract_strided_slice %1 {offsets = [1, 0, 0], sizes = [1, 1, 128], strides = [1, 1, 1]} : vector<4x1x128xf32> to vector<1x1x128xf32>
    %147 = vector.shape_cast %146 : vector<1x1x128xf32> to vector<1x128xf32>
    %148 = vector.extract_strided_slice %1 {offsets = [0, 0, 0], sizes = [1, 1, 128], strides = [1, 1, 1]} : vector<4x1x128xf32> to vector<1x1x128xf32>
    %149 = vector.shape_cast %148 : vector<1x1x128xf32> to vector<1x128xf32>
    %150 = arith.mulf %147, %149 : vector<1x128xf32>
    %151 = arith.mulf %150, %94 : vector<1x128xf32>
    %152 = vector.extract_strided_slice %1 {offsets = [1, 0, 0], sizes = [1, 1, 128], strides = [1, 1, 1]} : vector<4x1x128xf32> to vector<1x1x128xf32>
    %153 = vector.shape_cast %152 : vector<1x1x128xf32> to vector<1x128xf32>
    %154 = vector.extract_strided_slice %1 {offsets = [1, 0, 0], sizes = [1, 1, 128], strides = [1, 1, 1]} : vector<4x1x128xf32> to vector<1x1x128xf32>
    %155 = vector.shape_cast %154 : vector<1x1x128xf32> to vector<1x128xf32>
    %156 = arith.mulf %153, %155 : vector<1x128xf32>
    %157 = arith.mulf %156, %100 : vector<1x128xf32>
    %158 = arith.addf %151, %157 : vector<1x128xf32>
    %159 = arith.addf %94, %100 : vector<1x128xf32>
    %160 = vector.extract_strided_slice %1 {offsets = [1, 0, 0], sizes = [1, 1, 128], strides = [1, 1, 1]} : vector<4x1x128xf32> to vector<1x1x128xf32>
    %161 = vector.shape_cast %160 : vector<1x1x128xf32> to vector<1x128xf32>
    %162 = vector.extract_strided_slice %1 {offsets = [2, 0, 0], sizes = [1, 1, 128], strides = [1, 1, 1]} : vector<4x1x128xf32> to vector<1x1x128xf32>
    %163 = vector.shape_cast %162 : vector<1x1x128xf32> to vector<1x128xf32>
    %164 = arith.mulf %161, %163 : vector<1x128xf32>
    %165 = arith.mulf %164, %102 : vector<1x128xf32>
    %166 = arith.addf %158, %165 : vector<1x128xf32>
    %167 = arith.addf %159, %102 : vector<1x128xf32>
    %168 = vector.extract_strided_slice %1 {offsets = [1, 0, 0], sizes = [1, 1, 128], strides = [1, 1, 1]} : vector<4x1x128xf32> to vector<1x1x128xf32>
    %169 = vector.shape_cast %168 : vector<1x1x128xf32> to vector<1x128xf32>
    %170 = vector.extract_strided_slice %1 {offsets = [3, 0, 0], sizes = [1, 1, 128], strides = [1, 1, 1]} : vector<4x1x128xf32> to vector<1x1x128xf32>
    %171 = vector.shape_cast %170 : vector<1x1x128xf32> to vector<1x128xf32>
    %172 = arith.mulf %169, %171 : vector<1x128xf32>
    %173 = arith.mulf %172, %104 : vector<1x128xf32>
    %174 = arith.addf %166, %173 : vector<1x128xf32>
    %175 = arith.addf %167, %104 : vector<1x128xf32>
    %176 = tpu.reciprocal %175 : vector<1x128xf32> -> vector<1x128xf32>
    %177 = arith.mulf %174, %176 : vector<1x128xf32>
    %c0_8 = arith.constant 0 : index
    %c1_9 = arith.constant 1 : index
    %c0_10 = arith.constant 0 : index
    %c0_11 = arith.constant 0 : index
    %178 = vector.load %arg4[%c0_8, %c1_9, %c0_10, %c0_11] : memref<1x4x1x128xf32, #tpu.memory_space<vmem>>, vector<1x1x1x128xf32>
    %179 = vector.shape_cast %178 : vector<1x1x1x128xf32> to vector<1x128xf32>
    %180 = vector.shape_cast %177 : vector<1x128xf32> to vector<1x1x1x128xf32>
    tpu.vector_store %arg4[%c0_8, %c1_9, %c0_10, %c0_11], %180 {strides = array<i32>} : memref<1x4x1x128xf32, #tpu.memory_space<vmem>>, vector<1x1x1x128xf32>,
    %181 = vector.extract_strided_slice %1 {offsets = [2, 0, 0], sizes = [1, 1, 128], strides = [1, 1, 1]} : vector<4x1x128xf32> to vector<1x1x128xf32>
    %182 = vector.shape_cast %181 : vector<1x1x128xf32> to vector<1x128xf32>
    %183 = vector.extract_strided_slice %1 {offsets = [0, 0, 0], sizes = [1, 1, 128], strides = [1, 1, 1]} : vector<4x1x128xf32> to vector<1x1x128xf32>
    %184 = vector.shape_cast %183 : vector<1x1x128xf32> to vector<1x128xf32>
    %185 = arith.mulf %182, %184 : vector<1x128xf32>
    %186 = arith.mulf %185, %96 : vector<1x128xf32>
    %187 = vector.extract_strided_slice %1 {offsets = [2, 0, 0], sizes = [1, 1, 128], strides = [1, 1, 1]} : vector<4x1x128xf32> to vector<1x1x128xf32>
    %188 = vector.shape_cast %187 : vector<1x1x128xf32> to vector<1x128xf32>
    %189 = vector.extract_strided_slice %1 {offsets = [1, 0, 0], sizes = [1, 1, 128], strides = [1, 1, 1]} : vector<4x1x128xf32> to vector<1x1x128xf32>
    %190 = vector.shape_cast %189 : vector<1x1x128xf32> to vector<1x128xf32>
    %191 = arith.mulf %188, %190 : vector<1x128xf32>
    %192 = arith.mulf %191, %102 : vector<1x128xf32>
    %193 = arith.addf %186, %192 : vector<1x128xf32>
    %194 = arith.addf %96, %102 : vector<1x128xf32>
    %195 = vector.extract_strided_slice %1 {offsets = [2, 0, 0], sizes = [1, 1, 128], strides = [1, 1, 1]} : vector<4x1x128xf32> to vector<1x1x128xf32>
    %196 = vector.shape_cast %195 : vector<1x1x128xf32> to vector<1x128xf32>
    %197 = vector.extract_strided_slice %1 {offsets = [2, 0, 0], sizes = [1, 1, 128], strides = [1, 1, 1]} : vector<4x1x128xf32> to vector<1x1x128xf32>
    %198 = vector.shape_cast %197 : vector<1x1x128xf32> to vector<1x128xf32>
    %199 = arith.mulf %196, %198 : vector<1x128xf32>
    %200 = arith.mulf %199, %106 : vector<1x128xf32>
    %201 = arith.addf %193, %200 : vector<1x128xf32>
    %202 = arith.addf %194, %106 : vector<1x128xf32>
    %203 = vector.extract_strided_slice %1 {offsets = [2, 0, 0], sizes = [1, 1, 128], strides = [1, 1, 1]} : vector<4x1x128xf32> to vector<1x1x128xf32>
    %204 = vector.shape_cast %203 : vector<1x1x128xf32> to vector<1x128xf32>
    %205 = vector.extract_strided_slice %1 {offsets = [3, 0, 0], sizes = [1, 1, 128], strides = [1, 1, 1]} : vector<4x1x128xf32> to vector<1x1x128xf32>
    %206 = vector.shape_cast %205 : vector<1x1x128xf32> to vector<1x128xf32>
    %207 = arith.mulf %204, %206 : vector<1x128xf32>
    %208 = arith.mulf %207, %108 : vector<1x128xf32>
    %209 = arith.addf %201, %208 : vector<1x128xf32>
    %210 = arith.addf %202, %108 : vector<1x128xf32>
    %211 = tpu.reciprocal %210 : vector<1x128xf32> -> vector<1x128xf32>
    %212 = arith.mulf %209, %211 : vector<1x128xf32>
    %c0_12 = arith.constant 0 : index
    %c2_13 = arith.constant 2 : index
    %c0_14 = arith.constant 0 : index
    %c0_15 = arith.constant 0 : index
    %213 = vector.load %arg4[%c0_12, %c2_13, %c0_14, %c0_15] : memref<1x4x1x128xf32, #tpu.memory_space<vmem>>, vector<1x1x1x128xf32>
    %214 = vector.shape_cast %213 : vector<1x1x1x128xf32> to vector<1x128xf32>
    %215 = vector.shape_cast %212 : vector<1x128xf32> to vector<1x1x1x128xf32>
    tpu.vector_store %arg4[%c0_12, %c2_13, %c0_14, %c0_15], %215 {strides = array<i32>} : memref<1x4x1x128xf32, #tpu.memory_space<vmem>>, vector<1x1x1x128xf32>,
    %216 = vector.extract_strided_slice %1 {offsets = [3, 0, 0], sizes = [1, 1, 128], strides = [1, 1, 1]} : vector<4x1x128xf32> to vector<1x1x128xf32>
    %217 = vector.shape_cast %216 : vector<1x1x128xf32> to vector<1x128xf32>
    %218 = vector.extract_strided_slice %1 {offsets = [0, 0, 0], sizes = [1, 1, 128], strides = [1, 1, 1]} : vector<4x1x128xf32> to vector<1x1x128xf32>
    %219 = vector.shape_cast %218 : vector<1x1x128xf32> to vector<1x128xf32>
    %220 = arith.mulf %217, %219 : vector<1x128xf32>
    %221 = arith.mulf %220, %98 : vector<1x128xf32>
    %222 = vector.extract_strided_slice %1 {offsets = [3, 0, 0], sizes = [1, 1, 128], strides = [1, 1, 1]} : vector<4x1x128xf32> to vector<1x1x128xf32>
    %223 = vector.shape_cast %222 : vector<1x1x128xf32> to vector<1x128xf32>
    %224 = vector.extract_strided_slice %1 {offsets = [1, 0, 0], sizes = [1, 1, 128], strides = [1, 1, 1]} : vector<4x1x128xf32> to vector<1x1x128xf32>
    %225 = vector.shape_cast %224 : vector<1x1x128xf32> to vector<1x128xf32>
    %226 = arith.mulf %223, %225 : vector<1x128xf32>
    %227 = arith.mulf %226, %104 : vector<1x128xf32>
    %228 = arith.addf %221, %227 : vector<1x128xf32>
    %229 = arith.addf %98, %104 : vector<1x128xf32>
    %230 = vector.extract_strided_slice %1 {offsets = [3, 0, 0], sizes = [1, 1, 128], strides = [1, 1, 1]} : vector<4x1x128xf32> to vector<1x1x128xf32>
    %231 = vector.shape_cast %230 : vector<1x1x128xf32> to vector<1x128xf32>
    %232 = vector.extract_strided_slice %1 {offsets = [2, 0, 0], sizes = [1, 1, 128], strides = [1, 1, 1]} : vector<4x1x128xf32> to vector<1x1x128xf32>
    %233 = vector.shape_cast %232 : vector<1x1x128xf32> to vector<1x128xf32>
    %234 = arith.mulf %231, %233 : vector<1x128xf32>
    %235 = arith.mulf %234, %108 : vector<1x128xf32>
    %236 = arith.addf %228, %235 : vector<1x128xf32>
    %237 = arith.addf %229, %108 : vector<1x128xf32>
    %238 = vector.extract_strided_slice %1 {offsets = [3, 0, 0], sizes = [1, 1, 128], strides = [1, 1, 1]} : vector<4x1x128xf32> to vector<1x1x128xf32>
    %239 = vector.shape_cast %238 : vector<1x1x128xf32> to vector<1x128xf32>
    %240 = vector.extract_strided_slice %1 {offsets = [3, 0, 0], sizes = [1, 1, 128], strides = [1, 1, 1]} : vector<4x1x128xf32> to vector<1x1x128xf32>
    %241 = vector.shape_cast %240 : vector<1x1x128xf32> to vector<1x128xf32>
    %242 = arith.mulf %239, %241 : vector<1x128xf32>
    %243 = arith.mulf %242, %110 : vector<1x128xf32>
    %244 = arith.addf %236, %243 : vector<1x128xf32>
    %245 = arith.addf %237, %110 : vector<1x128xf32>
    %246 = tpu.reciprocal %245 : vector<1x128xf32> -> vector<1x128xf32>
    %247 = arith.mulf %244, %246 : vector<1x128xf32>
    %c0_16 = arith.constant 0 : index
    %c3_17 = arith.constant 3 : index
    %c0_18 = arith.constant 0 : index
    %c0_19 = arith.constant 0 : index
    %248 = vector.load %arg4[%c0_16, %c3_17, %c0_18, %c0_19] : memref<1x4x1x128xf32, #tpu.memory_space<vmem>>, vector<1x1x1x128xf32>
    %249 = vector.shape_cast %248 : vector<1x1x1x128xf32> to vector<1x128xf32>
    %250 = vector.shape_cast %247 : vector<1x128xf32> to vector<1x1x1x128xf32>
    tpu.vector_store %arg4[%c0_16, %c3_17, %c0_18, %c0_19], %250 {strides = array<i32>} : memref<1x4x1x128xf32, #tpu.memory_space<vmem>>, vector<1x1x1x128xf32>,
    return
  }
  func.func @transform_0(%arg0: i32, %arg1: i32, %arg2: memref<16xf32, #tpu.memory_space<smem>>) -> (i32, i32, i32, i32) {
    %c0_i32 = arith.constant 0 : i32
    %c0_i32_0 = arith.constant 0 : i32
    %c0_i32_1 = arith.constant 0 : i32
    return %arg0, %c0_i32, %arg1, %c0_i32_0 : i32, i32, i32, i32
  }
  func.func @transform_1(%arg0: i32, %arg1: i32, %arg2: memref<16xf32, #tpu.memory_space<smem>>) -> (i32, i32, i32, i32) {
    %c0_i32 = arith.constant 0 : i32
    %c0_i32_0 = arith.constant 0 : i32
    %c0_i32_1 = arith.constant 0 : i32
    return %arg0, %c0_i32, %arg1, %c0_i32_0 : i32, i32, i32, i32
  }
}

</mosaic_0001>

<bundles_post_ra>
// kernel: tpu_custom_call.1
= control target key start
LH: loop header
LB: loop body
LE: loop exit
PB: predicated region body
PF: predicated region fallthrough
CT: control target
= control target key end

     0   :  { %s693_s12 = smov [#allocation3]   ;;  %s946_s0 = inlined_call_operand.hbm [shape: f32[16], index: 0, kind: input, shape index: {}]   ;;  %s947_s1 = inlined_call_operand.hbm [shape: f32[2,4,1,128], index: 1, kind: input, shape index: {}]   ;;  %s948_s2 = inlined_call_operand.hbm [shape: f32[2,4,1,128], index: 2, kind: output, shape index: {}]  }
   0x1   :  { %s8_s11 = sshll.u32 %s946_s0, 4  ;;  %s9_s11 = int_to_ptr.hbm [resolvable:$true] %s8_s11 }
   0x2   :  { %11 = dma.hbm_to_smem %s9_s11, 16, %s693_s12, [#allocation2] }
   0x3   :  { %659 = dma.done.wait [#allocation2], 16 }
   0x4   :  { %660 = vsyncadd [#allocation2], 4294967280 }
   0x5   :  { %14 = sfence }
   0x6   :  { %15 = vsyncpa [#allocation5], 0 }
   0x7   :  { %17 = vsyncpa [#allocation5 + $0x1], 0 }
   0x8   :  { %18 = vsyncpa [#allocation6], 0 }
   0x9   :  { %20 = vsyncpa [#allocation6 + $0x1], 0  ;;  %s716_s13 = smov 0   ;;  %s718_s14 = smov 0  }
   0xa   :  { %s720_s15 = smov 0   ;;  %s722_s16 = smov 0  }
   0xb   :  { %s724_s17 = smov 0   ;;  %s726_s0 = smov 0  }
   0xc LB: > { %s445_s18 = sadd.s32 4294967295, %s691_s0   ;;  %s446_s19 = sadd.s32 4294967294, %s691_s0   ;;  %s691_s0 = sphi %s726_s0, %s26_s0   ;;  %s687_s17 = sphi %s724_s17, %s965_s17   ;;  %s683_s16 = sphi %s722_s16, %s964_s16   ;;  %s679_s15 = sphi %s720_s15, %s963_s15   ;;  %s675_s14 = sphi %s718_s14, %s962_s14   ;;  %s671_s13 = sphi %s716_s13, %s961_s13  }
   0xd   : > { %s38_s20 = sadd.s32 1, %s687_s17  ;;  %s47_s21 = sadd.s32 1, %s679_s15 }
   0xe   : > { %p40_p0 = scmp.ge.s32.totalorder %s38_s20, 2  ;;  %p54_p1 = scmp.ne.s32.totalorder %s679_s15, %s675_s14 }
   0xf   : > { %p55_p2 = scmp.eq.s32.totalorder %s691_s0, 0  ;;  %p60_p3 = scmp.ne.s32.totalorder %s675_s14, %s671_s13 }
  0x10   : > { %s967_s20 = smov (%p40_p0, %s38_s20), 0  ;;  %p61_p5 = scmp.eq.s32.totalorder %s445_s18, 0 }
  0x11   : > { %p757_p4 = por %p55_p2, %p54_p1  ;;  %s42_s23 = ssub.s32 %s687_s17, %s967_s20 }
  0x12   : > { %p86_p6 = scmp.eq.s32.totalorder %s445_s18, 1  ;;  %p45_p7 = scmp.eq.s32.totalorder %s42_s23, 0 }
  0x13   : > { %p763_p8 = por %p61_p5, %p60_p3  ;;  %p92_p10 = scmp.eq.s32.totalorder %s446_s19, 1 }
  0x14   : > { %p767_p9 = por %p86_p6, %p54_p1  ;;  %p448_p12 = scmp.ge.s32.totalorder %s691_s0, 2 }
  0x15   : > { %s772_s26 = scalar_select %p45_p7, %s679_s15, %s47_s21  }
  0x16   : > { %p774_p11 = por %p92_p10, %p60_p3  ;;  %p482_p13 = scmp.lt.s32.totalorder %s691_s0, 2 }
  0x17   : > { %s112_s28 = sand.u32 1, %s679_s15   ;;  %s450_s30 = sshll.u32 %s687_s17, 2 }
  0x18   : > { %s449_s29 = sshll.u32 %s112_s28, 2  ;;  %s121_s5 = scalar_lea.hbm %s947_s1, %s450_s30 }
  0x19   : > { %s116_s6 = scalar_lea.vmem [#allocation4], %s449_s29  ;;  %s122_s8 = sshll.u32 %s121_s5, 4  ;;  %s123_s8 = int_to_ptr.hbm [resolvable:$true] %s122_s8 }
  0x1a   : > { %s124_s7 = sshll.u32 %s116_s6, 4  ;;  %p475_p0 = pnand %p482_p13, %p757_p4  ;;  %s125_s7 = int_to_ptr.vmem [resolvable:$true] %s124_s7 }
  0x1b   : > { %p451_p1 = scmp.ge.s32.totalorder %s691_s0, 1  ;;  %s113_s9 = scalar_lea.sflag [#allocation5], %s112_s28 }
  0x1c   : > { %s694_s10 = smov 16   ;;  %s695_s11 = smov 1  }
  0x1d   : > { %477 = dma.hbm_to_vmem [thread:$0]  (!%p475_p0), %s123_s8, 64, %s125_s7, %s113_s9, %s694_s10, %s694_s10, %s695_s11  }
  0x1e   : > { %p132_p2 = scmp.lt.s32.totalorder %s691_s0, 3 }
  0x20   : > { %p133_p3 = pnand %p451_p1, %p132_p2 }
  0x21   : > { %s790_s12 = sand.u32 (!%p133_p3), 1, %s675_s14  }
  0x22   : > { %136 = sbr.rel (%p133_p3) target bundleno = 116 (0x74), region = 24  ;;  %s452_s18 = sshll.u32 (!%p133_p3), %s790_s12, 2 }
  0x23   : > { %s139_s19 = scalar_lea.sflag (!%p133_p3), [#allocation5], %s790_s12  ;;  %s142_s21 = scalar_lea.vmem (!%p133_p3), [#allocation4], %s452_s18 }
  0x27   : > { %662 = dma.done.wait (%p763_p8), %s139_s19, 64  }
  0x28   : > { %664 = vsyncadd (%p763_p8), %s139_s19, 4294967232  ;;  %s167_s22 = sld [smem:[#allocation3]]  ;;  %v162_v0 = vld [vmem:[%s142_s21] sm:$0x1]  ;;  %v163_v1 = vld [vmem:[%s142_s21 + $0x1] sm:$0x1] }
  0x29   : > { %s454_s23 = sld [smem:[#allocation3 + $0x1]]  ;;  %v164_v2 = vld [vmem:[%s142_s21 + $0x2] sm:$0x1]  ;;  %v165_v4 = vld [vmem:[%s142_s21 + $0x3] sm:$0x1]  ;;  %v802_v5 = vmul.f32 %v162_v0, %v162_v0  ;;  %v804_v6 = vmul.f32 %v163_v1, %v162_v0  ;;  %v813_v15 = vmul.f32 %v163_v1, %v163_v1  ;;  %s467_s7 = sshll.u32 %s683_s16, 2 }
  0x2a   : > { %s455_s28 = sld [smem:[#allocation3 + $0x2]]  ;;  %v806_v8 = vmul.f32 %v164_v2, %v162_v0  ;;  %v808_v10 = vmul.f32 %v165_v4, %v162_v0  ;;  %v816_v18 = vmul.f32 %v164_v2, %v163_v1  ;;  %v820_v22 = vmul.f32 %v165_v4, %v163_v1  ;;  %s888_s8 = scalar_lea.vmem [#allocation7], %s452_s18 }
  0x2b   : > { %s456_s29 = sld [smem:[#allocation3 + $0x3]]  ;;  %v823_v26 = vmul.f32 %v164_v2, %v164_v2  ;;  %v826_v30 = vmul.f32 %v165_v4, %v164_v2  ;;  %v829_v34 = vmul.f32 %v165_v4, %v165_v4  ;;  %s358_s10 = scalar_lea.hbm %s948_s2, %s467_s7 }
  0x2c   : > { %s457_s30 = sld [smem:[#allocation3 + $0x5]]  ;;  %s359_s11 = sshll.u32 %s888_s8, 4  ;;  %s360_s11 = int_to_ptr.vmem [resolvable:$true] %s359_s11 }
  0x2d   : > { %s800_s3 = sld [smem:[#allocation3 + $0x6]]  ;;  %s361_s18 = sshll.u32 %s358_s10, 4  ;;  %s362_s18 = int_to_ptr.hbm [resolvable:$true] %s361_s18 }
  0x2e   : > { %v168_v3 = vstv %s167_s22  ;;  %s459_s24 = sld [smem:[#allocation3 + $0x7]]  ;;  %s347_s19 = scalar_lea.sflag [#allocation6], %s790_s12 }
  0x2f   : > { %v172_v7 = vstv %s454_s23  ;;  %v169_v11 = vmul.f32 %v168_v3, %v802_v5  ;;  %s460_s4 = sld [smem:[#allocation3 + $0xa]]  ;;  %s621_s21 = sshra.s32 %s362_s18, 4  ;;  %s622_s21 = int_to_ptr.hbm [resolvable:$true] %s621_s21 }
  0x30   : > { %v176_v9 = vstv %s455_s28  ;;  %v173_v12 = vmul.f32 %v172_v7, %v804_v6  ;;  %s461_s5 = sld [smem:[#allocation3 + $0xb]]  ;;  %s623_s22 = scalar_lea.hbm %s622_s21, 4 }
  0x31   : > { %v180_v13 = vstv %s456_s29  ;;  %v177_v14 = vmul.f32 %v176_v9, %v806_v8  ;;  %s462_s6 = sld [smem:[#allocation3 + $0xf]]  ;;  %p624_p4 = scmp.ne.s32.totalorder %s622_s21, %s623_s22 }
  0x32   : > { %v184_v16 = vstv %s457_s30  ;;  %v181_v17 = vmul.f32 %v180_v13, %v808_v10  ;;  %v206_v19 = vmax.f32 %v169_v11, %v173_v12  ;;  %s627_s29 = scalar_lea.hbm %s948_s2, 8  ;;  %p628_p7 = scmp.lt.s32.totalorder %s622_s21, %s948_s2 }
  0x33   : > { %v188_v20 = vstv %s800_s3  ;;  %v185_v21 = vmul.f32 %v184_v16, %v813_v15  ;;  %p625_p5 = pnand %p624_p4, %p767_p9  ;;  %p629_p8 = scmp.lt.s32.totalorder %s627_s29, %s623_s22 }
  0x34   : > { %v207_v23 = vmax.f32 %v206_v19, %v177_v14  ;;  %v192_v24 = vstv %s459_s24  ;;  %v189_v25 = vmul.f32 %v188_v20, %v816_v18 }
  0x35   : > { %v196_v28 = vstv %s460_s4  ;;  %v193_v29 = vmul.f32 %v192_v24, %v820_v22  ;;  %p626_p6 = pneg %p625_p5  ;;  %p630_p10 = por %p629_p8, %p628_p7 }
  0x36   : > { %v208_v27 = vmax.f32 %v207_v23, %v181_v17  ;;  %v200_v32 = vstv %s461_s5  ;;  %v197_v33 = vmul.f32 %v196_v28, %v823_v26 }
  0x37   : > { %v204_v36 = vstv %s462_s6  ;;  %v201_v37 = vmul.f32 %v200_v32, %v826_v30  ;;  %p631_p13 = pnand %p630_p10, %p626_p6 }
  0x38   : > { %v209_v31 = vmax.f32 %v208_v27, %v185_v21  ;;  %v205_v39 = vmul.f32 %v204_v36, %v829_v34 }
  0x3a   : > { %v210_v35 = vmax.f32 %v209_v31, %v189_v25 }
  0x3c   : > { %v211_v38 = vmax.f32 %v210_v35, %v193_v29 }
  0x3e   : > { %v212_v40 = vmax.f32 %v211_v38, %v197_v33 }
  0x40   : > { %v213_v41 = vmax.f32 %v212_v40, %v201_v37 }
  0x42   : > { %v214_v42 = vmax.f32 %v213_v41, %v205_v39 }
  0x44   : > { %v215_v43 = vsub.f32 %v169_v11, %v214_v42  ;;  %v218_v44 = vsub.f32 %v173_v12, %v214_v42  ;;  %v221_v45 = vsub.f32 %v177_v14, %v214_v42  ;;  %v224_v46 = vsub.f32 %v181_v17, %v214_v42 }
  0x45   : > { %v230_v47 = vsub.f32 %v189_v25, %v214_v42  ;;  %v233_v48 = vsub.f32 %v193_v29, %v214_v42  ;;  %v239_v52 = vsub.f32 %v201_v37, %v214_v42  ;;  %v227_v54 = vsub.f32 %v185_v21, %v214_v42 }
  0x46   : > { %v216_v49 = vmul.f32 1.442695, %v215_v43  ;;  %v219_v50 = vmul.f32 1.442695, %v218_v44  ;;  %v222_v51 = vmul.f32 1.442695, %v221_v45  ;;  %v236_v56 = vsub.f32 %v197_v33, %v214_v42 }
  0x47   : > { %v225_v53 = vmul.f32 1.442695, %v224_v46  ;;  %v231_v55 = vmul.f32 1.442695, %v230_v47  ;;  %v234_v57 = vmul.f32 1.442695, %v233_v48  ;;  %v242_v59 = vsub.f32 %v205_v39, %v214_v42 }
  0x48   : > { %537 = vpow2.f32 %v216_v49  ;;  %v240_v58 = vmul.f32 1.442695, %v239_v52  ;;  %v228_v60 = vmul.f32 1.442695, %v227_v54  ;;  %v237_v61 = vmul.f32 1.442695, %v236_v56 }
  0x49   : > { %539 = vpow2.f32 %v219_v50  ;;  %v243_v63 = vmul.f32 1.442695, %v242_v59 }
  0x4a   : > { %541 = vpow2.f32 %v222_v51 }
  0x4b   : > { %543 = vpow2.f32 %v225_v53 }
  0x4c   : > { %545 = vpow2.f32 %v231_v55 }
  0x4d   : > { %547 = vpow2.f32 %v234_v57 }
  0x4e   : > { %v538_v62 = vpop.eup %537  ;;  %549 = vpow2.f32 %v240_v58 }
  0x4f   : > { %v540_v0 = vpop.eup %539  ;;  %551 = vpow2.f32 %v228_v60  ;;  %v245_v11 = vmul.f32 %v538_v62, %v802_v5 }
  0x50   : > { %v542_v1 = vpop.eup %541  ;;  %v248_v2 = vadd.f32 %v540_v0, %v538_v62  ;;  %553 = vpow2.f32 %v237_v61  ;;  %v246_v13 = vmul.f32 %v540_v0, %v804_v6 }
  0x51   : > { %v544_v3 = vpop.eup %543  ;;  %555 = vpow2.f32 %v243_v63  ;;  %v249_v21 = vmul.f32 %v542_v1, %v806_v8 }
  0x52   : > { %v546_v4 = vpop.eup %545  ;;  %v251_v7 = vadd.f32 %v542_v1, %v248_v2  ;;  %v247_v25 = vadd.f32 %v246_v13, %v245_v11  ;;  %v252_v5 = vmul.f32 %v544_v3, %v808_v10 }
  0x53   : > { %v548_v9 = vpop.eup %547  ;;  %v298_v16 = vadd.f32 %v546_v4, %v542_v1  ;;  %v274_v27 = vmul.f32 %v546_v4, %v816_v18 }
  0x54   : > { %v550_v12 = vpop.eup %549  ;;  %v254_v14 = vadd.f32 %v544_v3, %v251_v7  ;;  %v323_v17 = vadd.f32 %v548_v9, %v544_v3  ;;  %v840_v32 = vmul.f32 %v548_v9, %v820_v22  ;;  %v250_v37 = vadd.f32 %v249_v21, %v247_v25 }
  0x55   : > { %v552_v19 = vpop.eup %551  ;;  %v297_v38 = vadd.f32 %v274_v27, %v249_v21  ;;  %v302_v22 = vmul.f32 %v550_v12, %v826_v30 }
  0x56   : > { %v554_v20 = vpop.eup %553  ;;  %557 = vrcp.f32 %v254_v14  ;;  %v273_v23 = vadd.f32 %v552_v19, %v540_v0  ;;  %v325_v29 = vadd.f32 %v550_v12, %v323_v17  ;;  %v271_v6 = vmul.f32 %v552_v19, %v813_v15 }
  0x57   : > { %v556_v24 = vpop.eup %555  ;;  %v301_v28 = vadd.f32 %v554_v20, %v298_v16  ;;  %v264_v39 = vand.u32 2147483647, %v254_v14  ;;  %v266_v40 = vand.u32 2147483648, %v254_v14  ;;  %v299_v15 = vmul.f32 %v554_v20, %v823_v26 }
  0x58   : > { %v276_v31 = vadd.f32 %v546_v4, %v273_v23  ;;  %v846_v8 = vadd.f32 %v556_v24, %v325_v29  ;;  %v272_v10 = vadd.f32 %v271_v6, %v246_v13  ;;  %v322_v41 = vadd.f32 %v840_v32, %v252_v5 }
  0x59   : > { %v842_v33 = vadd.f32 %v550_v12, %v301_v28  ;;  %vm260_vm0 = vweird.f32 %v254_v14  ;;  %v253_v43 = vadd.f32 %v252_v5, %v250_v37  ;;  %vm854_vm2 = vcmp.eq.f32.partialorder %v264_v39, 8.507059e+37 }
  0x5a   : > { %v844_v35 = vadd.f32 %v548_v9, %v276_v31  ;;  %v267_v46 = vor.u32 1.1754944e-38, %v266_v40  ;;  %v275_v30 = vadd.f32 %v274_v27, %v272_v10  ;;  %v300_v49 = vadd.f32 %v299_v15, %v297_v38 }
  0x5b   : > { %559 = vrcp.f32 %v842_v33  ;;  %v316_v47 = vand.u32 2147483648, %v842_v33  ;;  %v324_v50 = vadd.f32 %v322_v41, %v302_v22  ;;  %v326_v51 = vmul.f32 %v556_v24, %v829_v34 }
  0x5c   : > { %v558_v36 = vpop.eup %557  ;;  %561 = vrcp.f32 %v844_v35  ;;  %vm310_vm4 = vweird.f32 %v842_v33  ;;  %v314_v55 = vand.u32 2147483647, %v842_v33  ;;  %vm285_vm5 = vweird.f32 %v844_v35 }
  0x5d   : > { %v256_v18 = vmul.f32 %v558_v36, %v254_v14  ;;  %vm261_vm1 = vweird.f32 %v558_v36  ;;  %563 = vrcp.f32 %v846_v8  ;;  %v289_v57 = vand.u32 2147483647, %v844_v35 }
  0x5e   : > { %vm859_vm3 = vmor %vm260_vm0, %vm261_vm1  ;;  %v291_v58 = vand.u32 2147483648, %v844_v35  ;;  %v317_v61 = vor.u32 1.1754944e-38, %v316_v47  ;;  %vm334_vm8 = vweird.f32 %v846_v8  ;;  %v340_v3 = vand.u32 2147483648, %v846_v8 }
  0x5f   : > { %v257_v42 = vsub.f32 1.0, %v256_v18  ;;  %v338_v11 = vand.u32 2147483647, %v846_v8  ;;  %v303_v14 = vadd.f32 %v302_v22, %v300_v49  ;;  %vm315_vm12 = vcmp.eq.f32.partialorder %v314_v55, 8.507059e+37 }
  0x60   : > { %v292_v13 = vor.u32 1.1754944e-38, %v291_v58  ;;  %v278_v17 = vadd.f32 %v840_v32, %v275_v30  ;;  %vm290_vm13 = vcmp.eq.f32.partialorder %v289_v57, 8.507059e+37  ;;  %v327_v23 = vadd.f32 %v326_v51, %v324_v50 }
  0x61   : > { %v258_v44 = vmul.f32 %v558_v36, %v257_v42  ;;  %v560_v48 = vpop.eup %559  ;;  %v341_v24 = vor.u32 1.1754944e-38, %v340_v3  ;;  %vm339_vm15 = vcmp.eq.f32.partialorder %v338_v11, 8.507059e+37 }
  0x62   : > { %v562_v52 = vpop.eup %561  ;;  %v306_v54 = vmul.f32 %v560_v48, %v842_v33  ;;  %vm311_vm6 = vweird.f32 %v560_v48 }
  0x63   : > { %v259_v53 = vadd.f32 %v558_v36, %v258_v44  ;;  %v281_v56 = vmul.f32 %v562_v52, %v844_v35  ;;  %v564_v59 = vpop.eup %563  ;;  %vm286_vm7 = vweird.f32 %v562_v52  ;;  %vm881_vm9 = vmor %vm310_vm4, %vm311_vm6 }
  0x64   : > { %v307_v60 = vsub.f32 1.0, %v306_v54  ;;  %v330_v0 = vmul.f32 %v564_v59, %v846_v8  ;;  %vm335_vm10 = vweird.f32 %v564_v59  ;;  %vm893_vm11 = vmor %vm285_vm5, %vm286_vm7 }
  0x65   : > { %v263_v34 = vsel %vm859_vm3, %v558_v36, %v259_v53  ;;  %v282_v63 = vsub.f32 1.0, %v281_v56  ;;  %vm336_vm14 = vmor %vm334_vm8, %vm335_vm10 }
  0x66   : > { %v268_v62 = vsel %vm854_vm2, %v267_v46, %v263_v34  ;;  %v308_v2 = vmul.f32 %v560_v48, %v307_v60  ;;  %v331_v9 = vsub.f32 1.0, %v330_v0 }
  0x67   : > { %v269_v1 = vmul.f32 %v268_v62, %v253_v43  ;;  %v283_v4 = vmul.f32 %v562_v52, %v282_v63 }
  0x68   : > { %v309_v16 = vadd.f32 %v560_v48, %v308_v2  ;;  %v332_v20 = vmul.f32 %v564_v59, %v331_v9 }
  0x69   : > { %270 = vst [vmem:[%s888_s8] sm:$0x1] %v269_v1  ;;  %v284_v19 = vadd.f32 %v562_v52, %v283_v4 }
  0x6a   : > { %v313_v21 = vsel %vm881_vm9, %v560_v48, %v309_v16  ;;  %v333_v28 = vadd.f32 %v564_v59, %v332_v20 }
  0x6b   : > { %v288_v25 = vsel %vm893_vm11, %v562_v52, %v284_v19  ;;  %v318_v27 = vsel %vm315_vm12, %v317_v61, %v313_v21 }
  0x6c   : > { %v293_v29 = vsel %vm290_vm13, %v292_v13, %v288_v25  ;;  %v319_v31 = vmul.f32 %v318_v27, %v303_v14  ;;  %v337_v6 = vsel %vm336_vm14, %v564_v59, %v333_v28 }
  0x6d   : > { %v294_v5 = vmul.f32 %v293_v29, %v278_v17  ;;  %v342_v32 = vsel %vm339_vm15, %v341_v24, %v337_v6 }
  0x6e   : > { %464 = vst [vmem:[%s888_s8 + $0x2] sm:$0x1] %v319_v31  ;;  %v343_v33 = vmul.f32 %v342_v32, %v327_v23 }
  0x6f   : > { %463 = vst [vmem:[%s888_s8 + $0x1] sm:$0x1] %v294_v5 }
  0x70   : > { %465 = vst [vmem:[%s888_s8 + $0x3] sm:$0x1] %v343_v33 }
  0x71   : > { %634 = shalt.err (!%p631_p13)
}
  0x72   : > { %s696_s12 = smov 16   ;;  %s697_s24 = smov 1  }
  0x73   : > { %472 = dma.vmem_to_hbm [thread:$0]  (%p767_p9), %s360_s11, 64, %s362_s18, %s347_s19, %s696_s12, %s696_s12, %s697_s24  }
  0x74 PF: > { %s376_s4 = sand.u32 1, %s671_s13   ;;  %p479_p0 = pnand %p448_p12, %p774_p11 }
  0x75   : > { %s377_s5 = scalar_lea.sflag [#allocation6], %s376_s4 }
  0x76   : > { %p480_p1 = pneg %p479_p0 }
  0x78   : > { %666 = dma.done.wait (%p480_p1), %s377_s5, 64  }
  0x79   : > { %668 = vsyncadd (%p480_p1), %s377_s5, 4294967232  ;;  %s26_s0 = sadd.s32 1, %s691_s0   ;;  %s961_s13 = smov %s675_s14 }
  0x7a   : > { %p23_p2 = scmp.ge.s32.totalorder %s26_s0, 4   ;;  %s962_s14 = smov %s679_s15 }
  0x7b   : > { %s963_s15 = smov %s772_s26  ;;  %s964_s16 = smov %s687_s17 }
  0x7c   : > { %s965_s17 = smov %s967_s20  ;;  %25 = sbr.rel (!%p23_p2) target bundleno = 12 (0xc), region = 72 }
  0x81   :  { %383 = vsyncpa [#allocation5], 1 }
  0x82   :  { %385 = vsyncpa [#allocation5 + $0x1], 1 }
  0x83   :  { %386 = vsyncpa [#allocation6], 1 }
  0x84   :  { %388 = vsyncpa [#allocation6 + $0x1], 1 }

</bundles_post_ra>
